<compile_context>
chip_gen: v6e
topology: v6e:2x2x1
jax: 0.10.0
libtpu: 0.0.40
codegen_flags: <defaults>
</compile_context>

<pallas_src>
import jax
import jax.numpy as jnp
from jax.experimental import pallas as pl
from jax.experimental.pallas import tpu as pltpu


def _round_up(x, m):
    return ((x + m - 1) // m) * m


def td3_q_kernel(s_ref, a_ref, w1s_ref, w1a_ref, b1_ref, w2_ref, b2_ref,
                 w3_ref, b3_ref, out_ref):
    """One batch tile of the TD3 Q-network forward.

    s:   (TB, S) bf16     a:   (TB, A) bf16      (fc1 is fused: s@W1s + a@W1a)
    w1s: (S, H) bf16      w1a: (A, H) bf16       b1: (1, H) f32
    w2:  (H, H) bf16                             b2: (1, H) f32
    w3:  (H, 1) bf16                             b3: (1, 1) f32
    out: (TB, 1) f32  -- Q(s, a), natural (unpadded) column output
    """
    h1 = (jnp.dot(s_ref[...], w1s_ref[...], preferred_element_type=jnp.float32)
          + jnp.dot(a_ref[...], w1a_ref[...], preferred_element_type=jnp.float32)
          + b1_ref[...])
    h1 = jnp.maximum(h1, 0.0)  # relu

    h2 = jnp.dot(h1.astype(w2_ref.dtype), w2_ref[...],
                 preferred_element_type=jnp.float32) + b2_ref[...]
    h2 = jnp.maximum(h2, 0.0)  # relu

    q = jnp.dot(h2.astype(w3_ref.dtype), w3_ref[...],
                preferred_element_type=jnp.float32) + b3_ref[...]
    out_ref[...] = q.astype(out_ref.dtype)


def prepare_params(params, state_dim, dtype=jnp.bfloat16):
    """One-time layout/dtype prep (hoisted out of the forward launch path).

    Splits W1 into state/action halves (so no concat is needed at runtime) and
    casts weights to bf16 for storage/streaming. Biases stay f32.
    """
    w1 = params["w1"]
    return {
        "w1s": w1[:state_dim].astype(dtype),
        "w1a": w1[state_dim:].astype(dtype),
        "b1": params["b1"].astype(jnp.float32),
        "w2": params["w2"].astype(dtype),
        "b2": params["b2"].astype(jnp.float32),
        "w3": params["w3"].astype(dtype),
        "b3": params["b3"].astype(jnp.float32),
    }


def td3_q_forward(state, action, prep, *, tile_b=2048):
    """Wrapper: tiles the batch and calls the Pallas kernel.

    `prep` is the output of prepare_params(). Returns (B, 1) f32 Q-values.
    """
    B, S = state.shape
    A = action.shape[1]
    H = prep["w2"].shape[0]
    dtype = prep["w1s"].dtype

    state = state.astype(dtype)
    action = action.astype(dtype)

    # Tile size must be a multiple of 8 sublanes.
    tile_b = max(8, (tile_b // 8) * 8)

    if B > tile_b:
        tb = tile_b                          # large batch: stream TILE_B rows/step
    elif B >= 512:
        tb = _round_up(pl.cdiv(B, 2), 8)     # >=2 tiles so both v7x TCs get work
    else:
        tb = _round_up(B, 8)                 # small batch: one full-sublane tile
    n_tiles = pl.cdiv(B, tb)
    bp = n_tiles * tb
    if bp != B:
        state = jnp.pad(state, ((0, bp - B), (0, 0)))
        action = jnp.pad(action, ((0, bp - B), (0, 0)))

    resident = lambda i: (0, 0)  # weights/biases: same block every grid step

    out = pl.pallas_call(
        td3_q_kernel,
        out_shape=jax.ShapeDtypeStruct((bp, 1), jnp.float32),
        grid=(n_tiles,),
        in_specs=[
            pl.BlockSpec((tb, S), lambda i: (i, 0)),  # state tile (streamed)
            pl.BlockSpec((tb, A), lambda i: (i, 0)),  # action tile (streamed)
            pl.BlockSpec((S, H), resident),           # w1 (state half)
            pl.BlockSpec((A, H), resident),           # w1 (action half)
            pl.BlockSpec((1, H), resident),           # b1
            pl.BlockSpec((H, H), resident),           # w2
            pl.BlockSpec((1, H), resident),           # b2
            pl.BlockSpec((H, 1), resident),           # w3
            pl.BlockSpec((1, 1), resident),           # b3
        ],
        out_specs=pl.BlockSpec((tb, 1), lambda i: (i, 0)),
        compiler_params=pltpu.CompilerParams(
            dimension_semantics=("parallel",)),
    )(state, action, prep["w1s"], prep["w1a"], prep["b1"],
      prep["w2"], prep["b2"], prep["w3"], prep["b3"])

    return out[:B]


def init_params(key, state_dim, action_dim, hidden_dim):
    """Deterministic synthetic parameters (shapes match the PyTorch module)."""
    ks = jax.random.split(key, 6)
    in_dim = state_dim + action_dim
    w1 = jax.random.normal(ks[0], (in_dim, hidden_dim), jnp.float32) * 0.1
    b1 = jax.random.normal(ks[1], (1, hidden_dim), jnp.float32) * 0.1
    w2 = jax.random.normal(ks[2], (hidden_dim, hidden_dim), jnp.float32) * 0.1
    b2 = jax.random.normal(ks[3], (1, hidden_dim), jnp.float32) * 0.1
    w3 = jax.random.normal(ks[4], (hidden_dim, 1), jnp.float32) * 0.1
    b3 = jax.random.normal(ks[5], (1, 1), jnp.float32) * 0.1
    return {"w1": w1, "b1": b1, "w2": w2, "b2": b2, "w3": w3, "b3": b3}


def reference_forward(state, action, p):
    """Plain-JAX f32 reference matching the PyTorch semantics."""
    x = jnp.concatenate([state, action], axis=1)
    h1 = jax.nn.relu(x @ p["w1"] + p["b1"])
    h2 = jax.nn.relu(h1 @ p["w2"] + p["b2"])
    return h2 @ p["w3"] + p["b3"]


if __name__ == "__main__":
    key = jax.random.PRNGKey(0)
    k_state, k_action, k_params, k_state2, k_action2 = jax.random.split(key, 5)

    batch = 2
    state_dim = 8
    action_dim = 4
    hidden_dim = 32

    params = init_params(k_params, state_dim, action_dim, hidden_dim)
    prep = prepare_params(params, state_dim)  # one-time layout/dtype prep

    # Small-batch path (rows padded 2 -> 8, single tile).
    state = jax.random.normal(k_state, (batch, state_dim), jnp.float32)
    action = jax.random.normal(k_action, (batch, action_dim), jnp.float32)
    q = jax.block_until_ready(td3_q_forward(state, action, prep))
    q_ref = reference_forward(state, action, params)
    assert q.shape == (batch, 1)
    # bf16 weights/activations with f32 accumulation -> loosened tolerance.
    assert jnp.allclose(q, q_ref, atol=2e-2, rtol=2e-2)

    # Mid-size batch path (>=512 rows -> two tiles, exercises megacore split
    # and row padding 600 -> 608).
    b2 = 600
    state2 = jax.random.normal(k_state2, (b2, state_dim), jnp.float32)
    action2 = jax.random.normal(k_action2, (b2, action_dim), jnp.float32)
    q2 = jax.block_until_ready(td3_q_forward(state2, action2, prep))
    q2_ref = reference_forward(state2, action2, params)
    assert q2.shape == (b2, 1)
    assert jnp.allclose(q2, q2_ref, atol=2e-2, rtol=2e-2)

    print("KERNEL_OK")
</pallas_src>

<mosaic_0001>
module attributes {stable_mosaic.version = 11 : i64} {
  func.func @td3_q_kernel(%arg0: i32, %arg1: memref<8x8xbf16, #tpu.memory_space<vmem>>, %arg2: memref<8x4xbf16, #tpu.memory_space<vmem>>, %arg3: memref<8x32xbf16, #tpu.memory_space<vmem>>, %arg4: memref<4x32xbf16, #tpu.memory_space<vmem>>, %arg5: memref<1x32xf32, #tpu.memory_space<vmem>>, %arg6: memref<32x32xbf16, #tpu.memory_space<vmem>>, %arg7: memref<1x32xf32, #tpu.memory_space<vmem>>, %arg8: memref<32x1xbf16, #tpu.memory_space<vmem>>, %arg9: memref<1x1xf32, #tpu.memory_space<vmem>>, %arg10: memref<8x1xf32, #tpu.memory_space<vmem>>) attributes {dimension_semantics = [#tpu.dimension_semantics<parallel>], iteration_bounds = array<i64: 1>, scalar_prefetch = 0 : i64, scratch_operands = 0 : i64, tpu.core_type = #tpu.core_type<tc>, window_params = [{transform_indices = @transform_0, window_bounds = array<i64: 8, 8>}, {transform_indices = @transform_1, window_bounds = array<i64: 8, 4>}, {pipeline_mode = #tpu.pipeline_mode<synchronous>, transform_indices = @transform_2, window_bounds = array<i64: 8, 32>}, {pipeline_mode = #tpu.pipeline_mode<synchronous>, transform_indices = @transform_3, window_bounds = array<i64: 4, 32>}, {pipeline_mode = #tpu.pipeline_mode<synchronous>, transform_indices = @transform_4, window_bounds = array<i64: 1, 32>}, {pipeline_mode = #tpu.pipeline_mode<synchronous>, transform_indices = @transform_5, window_bounds = array<i64: 32, 32>}, {pipeline_mode = #tpu.pipeline_mode<synchronous>, transform_indices = @transform_6, window_bounds = array<i64: 1, 32>}, {pipeline_mode = #tpu.pipeline_mode<synchronous>, transform_indices = @transform_7, window_bounds = array<i64: 32, 1>}, {pipeline_mode = #tpu.pipeline_mode<synchronous>, transform_indices = @transform_8, window_bounds = array<i64: 1, 1>}, {transform_indices = @transform_9, window_bounds = array<i64: 8, 1>}]} {
    %c0 = arith.constant 0 : index
    %c0_0 = arith.constant 0 : index
    %0 = vector.load %arg1[%c0, %c0_0] : memref<8x8xbf16, #tpu.memory_space<vmem>>, vector<8x8xbf16>
    %c0_1 = arith.constant 0 : index
    %c0_2 = arith.constant 0 : index
    %1 = vector.load %arg3[%c0_1, %c0_2] : memref<8x32xbf16, #tpu.memory_space<vmem>>, vector<8x32xbf16>
    %cst = arith.constant dense<0.000000e+00> : vector<8x32xf32>
    %2 = tpu.matmul %0, %1, %cst {dimension_numbers = #tpu.dot_dimension_numbers<[1], [0], [0], [1], [0, 0, 1, 1], [], []>} : vector<8x8xbf16>, vector<8x32xbf16>, vector<8x32xf32> -> vector<8x32xf32>
    %c0_3 = arith.constant 0 : index
    %c0_4 = arith.constant 0 : index
    %3 = vector.load %arg2[%c0_3, %c0_4] : memref<8x4xbf16, #tpu.memory_space<vmem>>, vector<8x4xbf16>
    %c0_5 = arith.constant 0 : index
    %c0_6 = arith.constant 0 : index
    %4 = vector.load %arg4[%c0_5, %c0_6] : memref<4x32xbf16, #tpu.memory_space<vmem>>, vector<4x32xbf16>
    %cst_7 = arith.constant dense<0.000000e+00> : vector<8x32xf32>
    %5 = tpu.matmul %3, %4, %cst_7 {dimension_numbers = #tpu.dot_dimension_numbers<[1], [0], [0], [1], [0, 0, 1, 1], [], []>} : vector<8x4xbf16>, vector<4x32xbf16>, vector<8x32xf32> -> vector<8x32xf32>
    %6 = arith.addf %2, %5 : vector<8x32xf32>
    %c0_8 = arith.constant 0 : index
    %c0_9 = arith.constant 0 : index
    %7 = vector.load %arg5[%c0_8, %c0_9] : memref<1x32xf32, #tpu.memory_space<vmem>>, vector<1x32xf32>
    %8 = vector.broadcast %7 : vector<1x32xf32> to vector<8x32xf32>
    %9 = arith.addf %6, %8 : vector<8x32xf32>
    %cst_10 = arith.constant 0.000000e+00 : f32
    %10 = vector.broadcast %cst_10 : f32 to vector<8x32xf32>
    %11 = arith.maximumf %9, %10 : vector<8x32xf32>
    %12 = arith.truncf %11 : vector<8x32xf32> to vector<8x32xbf16>
    %c0_11 = arith.constant 0 : index
    %c0_12 = arith.constant 0 : index
    %13 = vector.load %arg6[%c0_11, %c0_12] : memref<32x32xbf16, #tpu.memory_space<vmem>>, vector<32x32xbf16>
    %cst_13 = arith.constant dense<0.000000e+00> : vector<8x32xf32>
    %14 = tpu.matmul %12, %13, %cst_13 {dimension_numbers = #tpu.dot_dimension_numbers<[1], [0], [0], [1], [0, 0, 1, 1], [], []>} : vector<8x32xbf16>, vector<32x32xbf16>, vector<8x32xf32> -> vector<8x32xf32>
    %c0_14 = arith.constant 0 : index
    %c0_15 = arith.constant 0 : index
    %15 = vector.load %arg7[%c0_14, %c0_15] : memref<1x32xf32, #tpu.memory_space<vmem>>, vector<1x32xf32>
    %16 = vector.broadcast %15 : vector<1x32xf32> to vector<8x32xf32>
    %17 = arith.addf %14, %16 : vector<8x32xf32>
    %cst_16 = arith.constant 0.000000e+00 : f32
    %18 = vector.broadcast %cst_16 : f32 to vector<8x32xf32>
    %19 = arith.maximumf %17, %18 : vector<8x32xf32>
    %20 = arith.truncf %19 : vector<8x32xf32> to vector<8x32xbf16>
    %c0_17 = arith.constant 0 : index
    %c0_18 = arith.constant 0 : index
    %21 = vector.load %arg8[%c0_17, %c0_18] : memref<32x1xbf16, #tpu.memory_space<vmem>>, vector<32x1xbf16>
    %cst_19 = arith.constant dense<0.000000e+00> : vector<8x1xf32>
    %22 = tpu.matmul %20, %21, %cst_19 {dimension_numbers = #tpu.dot_dimension_numbers<[1], [0], [0], [1], [0, 0, 1, 1], [], []>} : vector<8x32xbf16>, vector<32x1xbf16>, vector<8x1xf32> -> vector<8x1xf32>
    %c0_20 = arith.constant 0 : index
    %c0_21 = arith.constant 0 : index
    %23 = vector.load %arg9[%c0_20, %c0_21] : memref<1x1xf32, #tpu.memory_space<vmem>>, vector<1x1xf32>
    %24 = vector.broadcast %23 : vector<1x1xf32> to vector<8x1xf32>
    %25 = arith.addf %22, %24 : vector<8x1xf32>
    %c0_22 = arith.constant 0 : index
    %c0_23 = arith.constant 0 : index
    %26 = vector.load %arg10[%c0_22, %c0_23] : memref<8x1xf32, #tpu.memory_space<vmem>>, vector<8x1xf32>
    tpu.vector_store %arg10[%c0_22, %c0_23], %25 {strides = array<i32>} : memref<8x1xf32, #tpu.memory_space<vmem>>, vector<8x1xf32>,
    return
  }
  func.func @transform_0(%arg0: i32) -> (i32, i32) {
    %c0_i32 = arith.constant 0 : i32
    %c0_i32_0 = arith.constant 0 : i32
    return %arg0, %c0_i32 : i32, i32
  }
  func.func @transform_1(%arg0: i32) -> (i32, i32) {
    %c0_i32 = arith.constant 0 : i32
    %c0_i32_0 = arith.constant 0 : i32
    return %arg0, %c0_i32 : i32, i32
  }
  func.func @transform_2(%arg0: i32) -> (i32, i32) {
    %c0_i32 = arith.constant 0 : i32
    %c0_i32_0 = arith.constant 0 : i32
    %c0_i32_1 = arith.constant 0 : i32
    return %c0_i32, %c0_i32_0 : i32, i32
  }
  func.func @transform_3(%arg0: i32) -> (i32, i32) {
    %c0_i32 = arith.constant 0 : i32
    %c0_i32_0 = arith.constant 0 : i32
    %c0_i32_1 = arith.constant 0 : i32
    return %c0_i32, %c0_i32_0 : i32, i32
  }
  func.func @transform_4(%arg0: i32) -> (i32, i32) {
    %c0_i32 = arith.constant 0 : i32
    %c0_i32_0 = arith.constant 0 : i32
    %c0_i32_1 = arith.constant 0 : i32
    return %c0_i32, %c0_i32_0 : i32, i32
  }
  func.func @transform_5(%arg0: i32) -> (i32, i32) {
    %c0_i32 = arith.constant 0 : i32
    %c0_i32_0 = arith.constant 0 : i32
    %c0_i32_1 = arith.constant 0 : i32
    return %c0_i32, %c0_i32_0 : i32, i32
  }
  func.func @transform_6(%arg0: i32) -> (i32, i32) {
    %c0_i32 = arith.constant 0 : i32
    %c0_i32_0 = arith.constant 0 : i32
    %c0_i32_1 = arith.constant 0 : i32
    return %c0_i32, %c0_i32_0 : i32, i32
  }
  func.func @transform_7(%arg0: i32) -> (i32, i32) {
    %c0_i32 = arith.constant 0 : i32
    %c0_i32_0 = arith.constant 0 : i32
    %c0_i32_1 = arith.constant 0 : i32
    return %c0_i32, %c0_i32_0 : i32, i32
  }
  func.func @transform_8(%arg0: i32) -> (i32, i32) {
    %c0_i32 = arith.constant 0 : i32
    %c0_i32_0 = arith.constant 0 : i32
    %c0_i32_1 = arith.constant 0 : i32
    return %c0_i32, %c0_i32_0 : i32, i32
  }
  func.func @transform_9(%arg0: i32) -> (i32, i32) {
    %c0_i32 = arith.constant 0 : i32
    %c0_i32_0 = arith.constant 0 : i32
    return %arg0, %c0_i32 : i32, i32
  }
}

</mosaic_0001>

<bundles_post_ra>
// kernel: tpu_custom_call.1
= control target key start
LH: loop header
LB: loop body
LE: loop exit
PB: predicated region body
PF: predicated region fallthrough
CT: control target
= control target key end

     0   :  { %vm43_vm0 = vcmask 1041408   ;;  %vm91_vm1 = vcmask 1043456   ;;  %v341_v0 = vmov 0.0   ;;  %vm342_vm2 = vmmov 0   ;;  %s431_s3 = inlined_call_operand.vmem [shape: bf16[4,32], index: 3, kind: input, shape index: {}]   ;;  %s432_s2 = inlined_call_operand.vmem [shape: bf16[8,32], index: 2, kind: input, shape index: {}]   ;;  %s433_s1 = inlined_call_operand.vmem [shape: bf16[8,4], index: 1, kind: input, shape index: {}]   ;;  %s434_s0 = inlined_call_operand.vmem [shape: bf16[8,8], index: 0, kind: input, shape index: {}]   ;;  %s435_s5 = inlined_call_operand.vmem [shape: bf16[32,32], index: 5, kind: input, shape index: {}]   ;;  %s436_s7 = inlined_call_operand.vmem [shape: bf16[32,1], index: 7, kind: input, shape index: {}]   ;;  %s437_s4 = inlined_call_operand.vmem [shape: f32[1,32], index: 4, kind: input, shape index: {}]   ;;  %s438_s8 = inlined_call_operand.<no memory space> [shape: f32[1,1], index: 8, kind: input, shape index: {}]   ;;  %s439_s6 = inlined_call_operand.vmem [shape: f32[1,32], index: 6, kind: input, shape index: {}]   ;;  %s440_s9 = inlined_call_operand.vmem [shape: f32[8,1], index: 9, kind: output, shape index: {}]  }
   0x1   :  { %307 = vmatprep.subr.bf16.mxu0 %v341_v0  ;;  %313 = vmatprep.subr.bf16.mxu1 %v341_v0  ;;  %v38_v1 = vld [vmem:[%s431_s3] sm:$0x3]  ;;  %vm39_vm3 = vcmask 31744   ;;  %vm87_vm4 = vcmask 64512   ;;  %v337_v7 = vld [vmem:[%s435_s5 + $0x8] sm:$0xff]   ;;  %vm168_vm5 = vcmask 261120   ;;  %v14_v24 = vstv %s438_s8 }
   0x2   :  { %v36_v2 = vld [vmem:[%s432_s2] sm:$0xf]  ;;  %v45_v3 = vsel %vm43_vm0, %v38_v1, 0  ;;  %309 = vmatprep.mubr.msk.bf16.mxu0 %vm342_vm2, %v341_v0  ;;  %315 = vmatprep.mubr.msk.bf16.mxu1 %vm342_vm2, %v341_v0  ;;  %v339_v9 = vld [vmem:[%s436_s7 + $0x8] sm:$0xff]   ;;  %15 = vst [vmem:[#allocation2] sm:$0x1] %v14_v24 }
   0x3   :  { %v93_v4 = vsel %vm91_vm1, %v36_v2, 0  ;;  %308 = vmatpush3.bf16.msra.mxu0 %v45_v3  ;;  %v37_v5 = vld [vmem:[%s433_s1] sm:$0xf]  ;;  %vm280_vm6 = vcmask 7168  }
   0x4   :  { %314 = vmatpush3.bf16.msra.mxu1 %v93_v4  ;;  %v35_v6 = vld [vmem:[%s434_s0] sm:$0xf]  ;;  %319 = vmatprep.subr.bf16.mxu0 %v341_v0 }
   0x5   :  { %327 = vmatprep.subr.bf16.mxu1 %v341_v0  ;;  %v338_v8 = vld [vmem:[%s435_s5] sm:$0xff]  }
   0x6   :  { %310 = vmatmul.mubr.msk.bf16.vlgmr.msra.gmra.mxu0 %vm39_vm3, %v37_v5  ;;  %v288_v12 = vld [vmem:[%s437_s4] ss:$0 sm:$0xff] }
   0x7   :  { %316 = vmatmul.mubr.msk.bf16.vlgmr.msra.gmra.mxu1 %vm87_vm4, %v35_v6  ;;  %323 = vmatprep.mubr.msk.bf16.mxu0 %vm342_vm2, %v341_v0  ;;  %v340_v23 = vld [vmem:[%s436_s7] sm:$0xff]  }
   0x8   :  { %331 = vmatprep.mubr.msk.bf16.mxu1 %vm342_vm2, %v341_v0  ;;  %320 = vmatpush3.bf16.msra.mxu0 %v337_v7  ;;  %v289_v25 = vld [vmem:[%s439_s6] ss:$0 sm:$0xff] }
   0x9   :  { %321 = vmatprep.subr.bf16.mxu0 %v341_v0  ;;  %328 = vmatpush3.bf16.msra.mxu1 %v339_v9  ;;  %v293_v33 = vld [vmem:[#allocation2] ss:$0 sm:$0xff] }
   0xa   :  { %329 = vmatprep.subr.bf16.mxu1 %v341_v0 }
   0xc   :  { %322 = vmatpush3.bf16.msra.mxu0 %v338_v8 }
   0xd   :  { %330 = vmatpush3.bf16.msra.mxu1 %v340_v23 }
  0xc6   :  { %v81_v10 = vpop.f32.mrf.mxu0 }
  0xc7   :  { %v129_v11 = vpop.f32.mrf.mxu1 }
  0xc8   :  { %v130_v13 = vadd.f32 %v129_v11, %v81_v10  ;;  %v311_v14 = vpop.f32.mrf.mxu0 }
  0xc9   :  { %v317_v15 = vpop.f32.mrf.mxu1 }
  0xca   :  { %v142_v16 = vadd.f32 %v288_v12, %v130_v13  ;;  %v84_v17 = vpop.f32.mrf.mxu0 }
  0xcb   :  { %v132_v18 = vpop.f32.mrf.mxu1 }
  0xcc   :  { %v143_v19 = vmax.f32 %v142_v16, 0.0  ;;  %v312_v20 = vpop.f32.mrf.mxu0 }
  0xcd   :  { %v318_v21 = vpop.f32.mrf.mxu1 }
  0xce   :  { %v144_v22 = vpack.c.bf16 %v143_v19, %v143_v19 }
  0xd0   :  { %324 = vmatmul.mubr.msk.bf16.vlgmr.msra.gmra.mxu0 %vm168_vm5, %v144_v22 }
 0x190   :  { %v206_v26 = vpop.f32.mrf.mxu0 }
 0x191   :  { %v207_v27 = vadd.f32 %v289_v25, %v206_v26 }
 0x192   :  { %v325_v28 = vpop.f32.mrf.mxu0 }
 0x193   :  { %v212_v29 = vmax.f32 %v207_v27, 0.0 }
 0x194   :  { %v209_v30 = vpop.f32.mrf.mxu0 }
 0x195   :  { %v213_v31 = vpack.c.bf16 %v212_v29, %v212_v29 }
 0x196   :  { %v326_v32 = vpop.f32.mrf.mxu0 }
 0x197   :  { %332 = vmatmul.mubr.msk.bf16.vlgmr.msra.gmra.mxu1 %vm168_vm5, %v213_v31 }
 0x257   :  { %v274_v34 = vpop.f32.mrf.mxu1 }
 0x258   :  { %v275_v35 = vadd.f32 %v293_v33, %v274_v34 }
 0x259   :  { %v333_v36 = vpop.f32.mrf.mxu1 }
 0x25a   :  { %281 = vst.msk [vmem:[%s440_s9] sm:$0xff] %vm280_vm6, %v275_v35 }
 0x25b   :  { %v277_v37 = vpop.f32.mrf.mxu1 }
 0x25d   :  { %v334_v38 = vpop.f32.mrf.mxu1 }

</bundles_post_ra>
